<compile_context>
chip_gen: v7x
topology: tpu7x:2x2x1
jax: 0.10.0
libtpu: 0.0.40
codegen_flags: <defaults>
</compile_context>

<pallas_src>
import functools

import jax
import jax.numpy as jnp
from jax.experimental import pallas as pl
from jax.experimental.pallas import tpu as pltpu


_LANE = 128      # vreg lane width
_SUBLANE = 8     # f32 sublane depth


def _round_up(x, m):
    return ((x + m - 1) // m) * m


# ----------------------------------------------------------------------------
# Chip detection (perf heuristics only; everything falls back to safe defaults).
# ----------------------------------------------------------------------------
def _detect_tpu():
    kind = ""
    try:
        kind = jax.devices()[0].device_kind.lower()
    except Exception:
        pass
    is_v7 = "v7" in kind
    info = {
        "num_cores": 2 if is_v7 else 1,                 # v7x: 2 TCs/chip; v5e/v6e: 1
        "vmem_bytes": (64 << 20) if is_v7 else (128 << 20),
        "has_bf16_eup": ("v6" in kind) or is_v7,        # v5e EUP has no bf16
    }
    try:
        hw = pltpu.get_tpu_info()
        for attr in ("vmem_capacity_bytes", "vmem_bytes", "vmem_size_bytes"):
            v = getattr(hw, attr, None)
            if v:
                info["vmem_bytes"] = int(v)
                break
    except Exception:
        pass
    return info


# ----------------------------------------------------------------------------
# Deterministic parameter init (mirrors _layer_init: orthogonal(std=1.414),
# bias = 0.0).  PyTorch nn.Linear weight is [out, in]; we orthogonalize in that
# shape, transpose to [in, out] for x @ W.  Layer 0 keeps K = condition_size
# (unpadded, so raw x can be fed directly); every layer's N (and later K) is
# zero-padded to a 128 multiple -> lane-dense MXU tiles and unmasked stores.
# The zero padding is mathematically inert (tanh(0) = 0) and sliced off.
# ----------------------------------------------------------------------------
def _orthogonal(key, out_dim, in_dim, gain=1.414, dtype=jnp.float32):
    rows, cols = out_dim, in_dim
    flat = jax.random.normal(key, (max(rows, cols), min(rows, cols)), dtype=jnp.float32)
    q, r = jnp.linalg.qr(flat)
    q = q * jnp.sign(jnp.diagonal(r))[None, :]      # sign fix, as torch does
    if rows < cols:
        q = q.T
    return (q[:rows, :cols] * gain).astype(dtype)


def init_forward_model_params(key, condition_size, nb_outputs, layers,
                              compute_dtype=jnp.bfloat16):
    sizes = [condition_size] + list(layers) + [nb_outputs]
    layer_params = []
    in_d, in_p = condition_size, condition_size         # layer-0 K stays unpadded
    for out_d in sizes[1:]:
        out_p = _round_up(out_d, _LANE)
        key, sub = jax.random.split(key)
        w_torch = _orthogonal(sub, out_d, in_d)          # [out, in], like nn.Linear
        w = jnp.zeros((in_p, out_p), jnp.float32).at[:in_d, :out_d].set(jnp.transpose(w_torch))
        b = jnp.zeros((1, out_p), dtype=jnp.float32)     # bias_const = 0.0
        layer_params.append((w.astype(compute_dtype), b))
        in_d, in_p = out_d, out_p
    return {
        "layers": layer_params,
        "in_features": condition_size,
        "out_features": nb_outputs,
        "padded_out": layer_params[-1][0].shape[1],
        "compute_dtype": compute_dtype,
    }


# ----------------------------------------------------------------------------
# Pallas kernel: full MLP forward pass for one batch tile.
# ----------------------------------------------------------------------------
def _mlp_kernel(n_layers, compute_dtype, tanh_in_compute, *refs):
    # refs = (x_ref, w0_ref, b0_ref, w1_ref, b1_ref, ..., o_ref)
    x_ref = refs[0]
    o_ref = refs[-1]
    h = x_ref[...].astype(compute_dtype)                  # in-kernel cast (no wrapper HBM copy)
    for li in range(n_layers):
        w_ref = refs[1 + 2 * li]
        b_ref = refs[2 + 2 * li]
        acc = jnp.dot(h, w_ref[...], preferred_element_type=jnp.float32) + b_ref[...]
        if li < n_layers - 1:
            if tanh_in_compute:
                h = jnp.tanh(acc.astype(compute_dtype))    # bf16 EUP path (v6e/v7x)
            else:
                h = jnp.tanh(acc).astype(compute_dtype)    # f32 EUP path (v5e)
        else:
            h = acc
    o_ref[...] = h.astype(o_ref.dtype)


# ----------------------------------------------------------------------------
# Batch-tile selection: VMEM-budgeted (incl. resident weights + f32 intermediates),
# 8-row aligned, generation-aware step split, bounded batch over-padding.
# ----------------------------------------------------------------------------
def _choose_batch_tile(B, in_features, out_p, max_p, weight_bytes,
                       num_cores, vmem_bytes, x_itemsize, out_itemsize, comp_itemsize):
    per_row = (2 * in_features * x_itemsize          # double-buffered input tile
               + 2 * out_p * out_itemsize            # double-buffered output tile
               + max_p * (2 * 4 + comp_itemsize))    # live f32 acc/tanh temp + compute-dtype h
    budget = max(1 << 20, vmem_bytes // 2 - weight_bytes)
    max_tile = 512 if num_cores > 1 else 1024        # v7x: 64 MiB/TC; v5e/v6e: one big tile
    tile = min(max_tile, max(_SUBLANE, budget // per_row))
    tile = max(_SUBLANE, (tile // _SUBLANE) * _SUBLANE)
    min_steps = 2 * num_cores if num_cores > 1 else 1  # keep both v7x TCs fed & double-buffered
    n_steps = max(min_steps, pl.cdiv(B, tile))
    # Re-derive the tile from the step count so B_pad - B stays < 8 rows per step.
    tile = min(max_tile, max(_SUBLANE, _round_up(pl.cdiv(B, n_steps), _SUBLANE)))
    return tile


def forward_model_apply(x, params, *, batch_tile=None, final_dtype=jnp.float32):
    """Applies the ForwardModel MLP.  x: [B, condition_size] float32."""
    layer_params = params["layers"]
    n_layers = len(layer_params)
    out_p = params["padded_out"]
    compute_dtype = params["compute_dtype"]
    out_dtype = compute_dtype                       # lane-dense store; cast post-slice if needed

    info = _detect_tpu()
    tanh_in_compute = (jnp.dtype(compute_dtype) == jnp.dtype(jnp.float32)) or info["has_bf16_eup"]

    B, in_features = x.shape
    assert in_features == params["in_features"]

    max_p = max(out_p, max(w.shape[1] for (w, _) in layer_params))
    weight_bytes = sum(w.size * w.dtype.itemsize + b.size * b.dtype.itemsize
                       for (w, b) in layer_params)
    comp_itemsize = jnp.dtype(compute_dtype).itemsize
    out_itemsize = jnp.dtype(out_dtype).itemsize
    x_itemsize = jnp.dtype(x.dtype).itemsize

    if batch_tile is None:
        batch_tile = _choose_batch_tile(B, in_features, out_p, max_p, weight_bytes,
                                        info["num_cores"], info["vmem_bytes"],
                                        x_itemsize, out_itemsize, comp_itemsize)
    batch_tile = max(_SUBLANE, (int(batch_tile) // _SUBLANE) * _SUBLANE)

    B_pad = _round_up(B, batch_tile)
    # Single (fused) pad only when needed; zero rows give zero outputs and are sliced off.
    x_in = x if B_pad == B else jnp.pad(x, ((0, B_pad - B), (0, 0)))
    grid_size = B_pad // batch_tile

    # VMEM footprint (weights single-buffered + in/out double-buffered + f32 intermediates).
    footprint = (weight_bytes
                 + 2 * batch_tile * in_features * x_itemsize
                 + 2 * batch_tile * out_p * out_itemsize
                 + batch_tile * max_p * (2 * 4 + comp_itemsize))
    vmem_limit = int(min(info["vmem_bytes"] - (4 << 20), max(2 * footprint, 32 << 20)))

    # Advisory cost estimate for XLA's scheduler.
    k_dims = [in_features] + [w.shape[1] for (w, _) in layer_params[:-1]]
    n_dims = [w.shape[1] for (w, _) in layer_params]
    flops = 2 * B_pad * sum(k * n for k, n in zip(k_dims, n_dims))
    transcendentals = B_pad * sum(n_dims[:-1])
    bytes_accessed = (x_in.size * x_itemsize + B_pad * out_p * out_itemsize + weight_bytes)

    kernel = functools.partial(_mlp_kernel, n_layers, compute_dtype, tanh_in_compute)

    def _build(conservative):
        def resident_spec(shape):
            if conservative:
                return pl.BlockSpec(shape, lambda i: (0, 0))
            # Constant index_map -> stays resident; single buffer halves weight VMEM.
            return pl.BlockSpec(shape, lambda i: (0, 0), pipeline_mode=pl.Buffered(1))

        in_specs = [pl.BlockSpec((batch_tile, in_features), lambda i: (i, 0))]
        for (w, b) in layer_params:
            in_specs.append(resident_spec(w.shape))
            in_specs.append(resident_spec(b.shape))
        out_spec = pl.BlockSpec((batch_tile, out_p), lambda i: (i, 0))

        if (not conservative and info["num_cores"] > 1
                and grid_size >= info["num_cores"] and grid_size % info["num_cores"] == 0):
            semantics = (pltpu.CORE_PARALLEL,)        # shard batch tiles across v7x TCs
        else:
            semantics = ("parallel",)

        return pl.pallas_call(
            kernel,
            out_shape=jax.ShapeDtypeStruct((B_pad, out_p), out_dtype),
            grid_spec=pltpu.PrefetchScalarGridSpec(
                num_scalar_prefetch=0,
                grid=(grid_size,),
                in_specs=in_specs,
                out_specs=out_spec,
            ),
            compiler_params=pltpu.CompilerParams(
                dimension_semantics=semantics,
                vmem_limit_bytes=vmem_limit,
            ),
            cost_estimate=pl.CostEstimate(
                flops=flops,
                transcendentals=transcendentals,
                bytes_accessed=bytes_accessed,
            ),
        )

    flat_args = [x_in]
    for (w, b) in layer_params:
        flat_args.extend([w, b])

    try:
        y = _build(conservative=False)(*flat_args)
    except Exception:
        # Fallback if Buffered(1)/CORE_PARALLEL is unsupported on this jax/chip combo.
        y = _build(conservative=True)(*flat_args)

    return y[:B, :params["out_features"]].astype(final_dtype)


# ----------------------------------------------------------------------------
# Pure-JAX reference (same math as the PyTorch module).
# ----------------------------------------------------------------------------
def forward_model_ref(x, params):
    h = x.astype(jnp.float32)
    lp = params["layers"]
    for li, (w, b) in enumerate(lp):
        h = h @ w.astype(jnp.float32) + b
        if li < len(lp) - 1:
            h = jnp.tanh(h)
    return h[:, :params["out_features"]]


if __name__ == "__main__":
    # Small shapes consistent with ForwardModel(condition_size, nb_outputs, layers)
    condition_size = 32
    nb_outputs = 16
    layers = (64, 64)
    batch = 8

    key = jax.random.PRNGKey(0)
    key_p, key_x = jax.random.split(key)
    x = jax.random.normal(key_x, (batch, condition_size), dtype=jnp.float32)

    # f32 operand path — tight check against the pure-JAX reference.
    params_f32 = init_forward_model_params(key_p, condition_size, nb_outputs, layers,
                                           compute_dtype=jnp.float32)
    y_f32 = jax.block_until_ready(forward_model_apply(x, params_f32))
    y_ref = forward_model_ref(x, params_f32)
    assert y_f32.shape == (batch, nb_outputs)
    assert jnp.allclose(y_f32, y_ref, atol=1e-5, rtol=1e-5)

    # bf16 operand / f32 accumulation path (default; preferred on v6e/v7x MXU).
    params_bf16 = init_forward_model_params(key_p, condition_size, nb_outputs, layers,
                                            compute_dtype=jnp.bfloat16)
    y_bf16 = jax.block_until_ready(forward_model_apply(x, params_bf16))
    y_ref16 = forward_model_ref(x, params_bf16)
    assert y_bf16.shape == (batch, nb_outputs)
    assert jnp.allclose(y_bf16, y_ref16, atol=5e-2, rtol=5e-2)

    print("KERNEL_OK")
</pallas_src>

<mosaic_0001>
module attributes {stable_mosaic.version = 11 : i64} {
  func.func @_mlp_kernel(%arg0: i32, %arg1: memref<8x32xf32, #tpu.memory_space<vmem>>, %arg2: memref<32x128xf32, #tpu.memory_space<vmem>>, %arg3: memref<1x128xf32, #tpu.memory_space<vmem>>, %arg4: memref<128x128xf32, #tpu.memory_space<vmem>>, %arg5: memref<1x128xf32, #tpu.memory_space<vmem>>, %arg6: memref<128x128xf32, #tpu.memory_space<vmem>>, %arg7: memref<1x128xf32, #tpu.memory_space<vmem>>, %arg8: memref<8x128xf32, #tpu.memory_space<vmem>>) attributes {dimension_semantics = [#tpu.dimension_semantics<parallel>], iteration_bounds = array<i64: 1>, scalar_prefetch = 0 : i64, scratch_operands = 0 : i64, tpu.core_type = #tpu.core_type<tc>, window_params = [{transform_indices = @transform_0, window_bounds = array<i64: 8, 32>}, {pipeline_mode = #tpu.pipeline_mode<synchronous>, transform_indices = @transform_1, window_bounds = array<i64: 32, 128>}, {pipeline_mode = #tpu.pipeline_mode<synchronous>, transform_indices = @transform_2, window_bounds = array<i64: 1, 128>}, {pipeline_mode = #tpu.pipeline_mode<synchronous>, transform_indices = @transform_3, window_bounds = array<i64: 128, 128>}, {pipeline_mode = #tpu.pipeline_mode<synchronous>, transform_indices = @transform_4, window_bounds = array<i64: 1, 128>}, {pipeline_mode = #tpu.pipeline_mode<synchronous>, transform_indices = @transform_5, window_bounds = array<i64: 128, 128>}, {pipeline_mode = #tpu.pipeline_mode<synchronous>, transform_indices = @transform_6, window_bounds = array<i64: 1, 128>}, {transform_indices = @transform_7, window_bounds = array<i64: 8, 128>}]} {
    %c0 = arith.constant 0 : index
    %c0_0 = arith.constant 0 : index
    %0 = vector.load %arg1[%c0, %c0_0] : memref<8x32xf32, #tpu.memory_space<vmem>>, vector<8x32xf32>
    %c0_1 = arith.constant 0 : index
    %c0_2 = arith.constant 0 : index
    %1 = vector.load %arg2[%c0_1, %c0_2] : memref<32x128xf32, #tpu.memory_space<vmem>>, vector<32x128xf32>
    %cst = arith.constant dense<0.000000e+00> : vector<8x128xf32>
    %2 = tpu.matmul %0, %1, %cst {dimension_numbers = #tpu.dot_dimension_numbers<[1], [0], [0], [1], [0, 0, 1, 1], [], []>} : vector<8x32xf32>, vector<32x128xf32>, vector<8x128xf32> -> vector<8x128xf32>
    %c0_3 = arith.constant 0 : index
    %c0_4 = arith.constant 0 : index
    %3 = vector.load %arg3[%c0_3, %c0_4] : memref<1x128xf32, #tpu.memory_space<vmem>>, vector<1x128xf32>
    %4 = vector.broadcast %3 : vector<1x128xf32> to vector<8x128xf32>
    %5 = arith.addf %2, %4 : vector<8x128xf32>
    %6 = math.tanh %5 : vector<8x128xf32>
    %c0_5 = arith.constant 0 : index
    %c0_6 = arith.constant 0 : index
    %7 = vector.load %arg4[%c0_5, %c0_6] : memref<128x128xf32, #tpu.memory_space<vmem>>, vector<128x128xf32>
    %cst_7 = arith.constant dense<0.000000e+00> : vector<8x128xf32>
    %8 = tpu.matmul %6, %7, %cst_7 {dimension_numbers = #tpu.dot_dimension_numbers<[1], [0], [0], [1], [0, 0, 1, 1], [], []>} : vector<8x128xf32>, vector<128x128xf32>, vector<8x128xf32> -> vector<8x128xf32>
    %c0_8 = arith.constant 0 : index
    %c0_9 = arith.constant 0 : index
    %9 = vector.load %arg5[%c0_8, %c0_9] : memref<1x128xf32, #tpu.memory_space<vmem>>, vector<1x128xf32>
    %10 = vector.broadcast %9 : vector<1x128xf32> to vector<8x128xf32>
    %11 = arith.addf %8, %10 : vector<8x128xf32>
    %12 = math.tanh %11 : vector<8x128xf32>
    %c0_10 = arith.constant 0 : index
    %c0_11 = arith.constant 0 : index
    %13 = vector.load %arg6[%c0_10, %c0_11] : memref<128x128xf32, #tpu.memory_space<vmem>>, vector<128x128xf32>
    %cst_12 = arith.constant dense<0.000000e+00> : vector<8x128xf32>
    %14 = tpu.matmul %12, %13, %cst_12 {dimension_numbers = #tpu.dot_dimension_numbers<[1], [0], [0], [1], [0, 0, 1, 1], [], []>} : vector<8x128xf32>, vector<128x128xf32>, vector<8x128xf32> -> vector<8x128xf32>
    %c0_13 = arith.constant 0 : index
    %c0_14 = arith.constant 0 : index
    %15 = vector.load %arg7[%c0_13, %c0_14] : memref<1x128xf32, #tpu.memory_space<vmem>>, vector<1x128xf32>
    %16 = vector.broadcast %15 : vector<1x128xf32> to vector<8x128xf32>
    %17 = arith.addf %14, %16 : vector<8x128xf32>
    %c0_15 = arith.constant 0 : index
    %c0_16 = arith.constant 0 : index
    %18 = vector.load %arg8[%c0_15, %c0_16] : memref<8x128xf32, #tpu.memory_space<vmem>>, vector<8x128xf32>
    tpu.vector_store %arg8[%c0_15, %c0_16], %17 {strides = array<i32>} : memref<8x128xf32, #tpu.memory_space<vmem>>, vector<8x128xf32>,
    return
  }
  func.func @transform_0(%arg0: i32) -> (i32, i32) {
    %c0_i32 = arith.constant 0 : i32
    %c0_i32_0 = arith.constant 0 : i32
    return %arg0, %c0_i32 : i32, i32
  }
  func.func @transform_1(%arg0: i32) -> (i32, i32) {
    %c0_i32 = arith.constant 0 : i32
    %c0_i32_0 = arith.constant 0 : i32
    %c0_i32_1 = arith.constant 0 : i32
    return %c0_i32, %c0_i32_0 : i32, i32
  }
  func.func @transform_2(%arg0: i32) -> (i32, i32) {
    %c0_i32 = arith.constant 0 : i32
    %c0_i32_0 = arith.constant 0 : i32
    %c0_i32_1 = arith.constant 0 : i32
    return %c0_i32, %c0_i32_0 : i32, i32
  }
  func.func @transform_3(%arg0: i32) -> (i32, i32) {
    %c0_i32 = arith.constant 0 : i32
    %c0_i32_0 = arith.constant 0 : i32
    %c0_i32_1 = arith.constant 0 : i32
    return %c0_i32, %c0_i32_0 : i32, i32
  }
  func.func @transform_4(%arg0: i32) -> (i32, i32) {
    %c0_i32 = arith.constant 0 : i32
    %c0_i32_0 = arith.constant 0 : i32
    %c0_i32_1 = arith.constant 0 : i32
    return %c0_i32, %c0_i32_0 : i32, i32
  }
  func.func @transform_5(%arg0: i32) -> (i32, i32) {
    %c0_i32 = arith.constant 0 : i32
    %c0_i32_0 = arith.constant 0 : i32
    %c0_i32_1 = arith.constant 0 : i32
    return %c0_i32, %c0_i32_0 : i32, i32
  }
  func.func @transform_6(%arg0: i32) -> (i32, i32) {
    %c0_i32 = arith.constant 0 : i32
    %c0_i32_0 = arith.constant 0 : i32
    %c0_i32_1 = arith.constant 0 : i32
    return %c0_i32, %c0_i32_0 : i32, i32
  }
  func.func @transform_7(%arg0: i32) -> (i32, i32) {
    %c0_i32 = arith.constant 0 : i32
    %c0_i32_0 = arith.constant 0 : i32
    return %arg0, %c0_i32 : i32, i32
  }
}

module attributes {stable_mosaic.version = 11 : i64} {
  func.func @_mlp_kernel(%arg0: i32, %arg1: memref<8x32xf32, #tpu.memory_space<vmem>>, %arg2: memref<32x128xf32, #tpu.memory_space<vmem>>, %arg3: memref<1x128xf32, #tpu.memory_space<vmem>>, %arg4: memref<128x128xf32, #tpu.memory_space<vmem>>, %arg5: memref<1x128xf32, #tpu.memory_space<vmem>>, %arg6: memref<128x128xf32, #tpu.memory_space<vmem>>, %arg7: memref<1x128xf32, #tpu.memory_space<vmem>>, %arg8: memref<8x128xf32, #tpu.memory_space<vmem>>) attributes {dimension_semantics = [#tpu.dimension_semantics<parallel>], iteration_bounds = array<i64: 1>, scalar_prefetch = 0 : i64, scratch_operands = 0 : i64, tpu.core_type = #tpu.core_type<tc>, window_params = [{transform_indices = @transform_0, window_bounds = array<i64: 8, 32>}, {pipeline_mode = #tpu.pipeline_mode<synchronous>, transform_indices = @transform_1, window_bounds = array<i64: 32, 128>}, {pipeline_mode = #tpu.pipeline_mode<synchronous>, transform_indices = @transform_2, window_bounds = array<i64: 1, 128>}, {pipeline_mode = #tpu.pipeline_mode<synchronous>, transform_indices = @transform_3, window_bounds = array<i64: 128, 128>}, {pipeline_mode = #tpu.pipeline_mode<synchronous>, transform_indices = @transform_4, window_bounds = array<i64: 1, 128>}, {pipeline_mode = #tpu.pipeline_mode<synchronous>, transform_indices = @transform_5, window_bounds = array<i64: 128, 128>}, {pipeline_mode = #tpu.pipeline_mode<synchronous>, transform_indices = @transform_6, window_bounds = array<i64: 1, 128>}, {transform_indices = @transform_7, window_bounds = array<i64: 8, 128>}]} {
    %c0 = arith.constant 0 : index
    %c0_0 = arith.constant 0 : index
    %0 = vector.load %arg1[%c0, %c0_0] : memref<8x32xf32, #tpu.memory_space<vmem>>, vector<8x32xf32>
    %c0_1 = arith.constant 0 : index
    %c0_2 = arith.constant 0 : index
    %1 = vector.load %arg2[%c0_1, %c0_2] : memref<32x128xf32, #tpu.memory_space<vmem>>, vector<32x128xf32>
    %cst = arith.constant dense<0.000000e+00> : vector<8x128xf32>
    %2 = tpu.matmul %0, %1, %cst {dimension_numbers = #tpu.dot_dimension_numbers<[1], [0], [0], [1], [0, 0, 1, 1], [], []>} : vector<8x32xf32>, vector<32x128xf32>, vector<8x128xf32> -> vector<8x128xf32>
    %c0_3 = arith.constant 0 : index
    %c0_4 = arith.constant 0 : index
    %3 = vector.load %arg3[%c0_3, %c0_4] : memref<1x128xf32, #tpu.memory_space<vmem>>, vector<1x128xf32>
    %4 = vector.broadcast %3 : vector<1x128xf32> to vector<8x128xf32>
    %5 = arith.addf %2, %4 : vector<8x128xf32>
    %6 = math.tanh %5 : vector<8x128xf32>
    %c0_5 = arith.constant 0 : index
    %c0_6 = arith.constant 0 : index
    %7 = vector.load %arg4[%c0_5, %c0_6] : memref<128x128xf32, #tpu.memory_space<vmem>>, vector<128x128xf32>
    %cst_7 = arith.constant dense<0.000000e+00> : vector<8x128xf32>
    %8 = tpu.matmul %6, %7, %cst_7 {dimension_numbers = #tpu.dot_dimension_numbers<[1], [0], [0], [1], [0, 0, 1, 1], [], []>} : vector<8x128xf32>, vector<128x128xf32>, vector<8x128xf32> -> vector<8x128xf32>
    %c0_8 = arith.constant 0 : index
    %c0_9 = arith.constant 0 : index
    %9 = vector.load %arg5[%c0_8, %c0_9] : memref<1x128xf32, #tpu.memory_space<vmem>>, vector<1x128xf32>
    %10 = vector.broadcast %9 : vector<1x128xf32> to vector<8x128xf32>
    %11 = arith.addf %8, %10 : vector<8x128xf32>
    %12 = math.tanh %11 : vector<8x128xf32>
    %c0_10 = arith.constant 0 : index
    %c0_11 = arith.constant 0 : index
    %13 = vector.load %arg6[%c0_10, %c0_11] : memref<128x128xf32, #tpu.memory_space<vmem>>, vector<128x128xf32>
    %cst_12 = arith.constant dense<0.000000e+00> : vector<8x128xf32>
    %14 = tpu.matmul %12, %13, %cst_12 {dimension_numbers = #tpu.dot_dimension_numbers<[1], [0], [0], [1], [0, 0, 1, 1], [], []>} : vector<8x128xf32>, vector<128x128xf32>, vector<8x128xf32> -> vector<8x128xf32>
    %c0_13 = arith.constant 0 : index
    %c0_14 = arith.constant 0 : index
    %15 = vector.load %arg7[%c0_13, %c0_14] : memref<1x128xf32, #tpu.memory_space<vmem>>, vector<1x128xf32>
    %16 = vector.broadcast %15 : vector<1x128xf32> to vector<8x128xf32>
    %17 = arith.addf %14, %16 : vector<8x128xf32>
    %c0_15 = arith.constant 0 : index
    %c0_16 = arith.constant 0 : index
    %18 = vector.load %arg8[%c0_15, %c0_16] : memref<8x128xf32, #tpu.memory_space<vmem>>, vector<8x128xf32>
    tpu.vector_store %arg8[%c0_15, %c0_16], %17 {strides = array<i32>} : memref<8x128xf32, #tpu.memory_space<vmem>>, vector<8x128xf32>,
    return
  }
  func.func @transform_0(%arg0: i32) -> (i32, i32) {
    %c0_i32 = arith.constant 0 : i32
    %c0_i32_0 = arith.constant 0 : i32
    return %arg0, %c0_i32 : i32, i32
  }
  func.func @transform_1(%arg0: i32) -> (i32, i32) {
    %c0_i32 = arith.constant 0 : i32
    %c0_i32_0 = arith.constant 0 : i32
    %c0_i32_1 = arith.constant 0 : i32
    return %c0_i32, %c0_i32_0 : i32, i32
  }
  func.func @transform_2(%arg0: i32) -> (i32, i32) {
    %c0_i32 = arith.constant 0 : i32
    %c0_i32_0 = arith.constant 0 : i32
    %c0_i32_1 = arith.constant 0 : i32
    return %c0_i32, %c0_i32_0 : i32, i32
  }
  func.func @transform_3(%arg0: i32) -> (i32, i32) {
    %c0_i32 = arith.constant 0 : i32
    %c0_i32_0 = arith.constant 0 : i32
    %c0_i32_1 = arith.constant 0 : i32
    return %c0_i32, %c0_i32_0 : i32, i32
  }
  func.func @transform_4(%arg0: i32) -> (i32, i32) {
    %c0_i32 = arith.constant 0 : i32
    %c0_i32_0 = arith.constant 0 : i32
    %c0_i32_1 = arith.constant 0 : i32
    return %c0_i32, %c0_i32_0 : i32, i32
  }
  func.func @transform_5(%arg0: i32) -> (i32, i32) {
    %c0_i32 = arith.constant 0 : i32
    %c0_i32_0 = arith.constant 0 : i32
    %c0_i32_1 = arith.constant 0 : i32
    return %c0_i32, %c0_i32_0 : i32, i32
  }
  func.func @transform_6(%arg0: i32) -> (i32, i32) {
    %c0_i32 = arith.constant 0 : i32
    %c0_i32_0 = arith.constant 0 : i32
    %c0_i32_1 = arith.constant 0 : i32
    return %c0_i32, %c0_i32_0 : i32, i32
  }
  func.func @transform_7(%arg0: i32) -> (i32, i32) {
    %c0_i32 = arith.constant 0 : i32
    %c0_i32_0 = arith.constant 0 : i32
    return %arg0, %c0_i32 : i32, i32
  }
}

</mosaic_0001>

<bundles_post_ra>
// kernel: tpu_custom_call.1
= control target key start
LH: loop header
LB: loop body
LE: loop exit
PB: predicated region body
PF: predicated region fallthrough
CT: control target
= control target key end

     0   :  { %12 = vsyncpa [#allocation3], 0  ;;  %s831_s0 = inlined_call_operand.hbm [shape: f32[8,32], index: 0, kind: input, shape index: {}]   ;;  %s832_s1 = inlined_call_operand.hbm [shape: f32[32,128], index: 1, kind: input, shape index: {}]   ;;  %s833_s2 = inlined_call_operand.vmem [shape: f32[1,128], index: 2, kind: input, shape index: {}]   ;;  %s834_s3 = inlined_call_operand.hbm [shape: f32[128,128], index: 3, kind: input, shape index: {}]   ;;  %s835_s4 = inlined_call_operand.vmem [shape: f32[1,128], index: 4, kind: input, shape index: {}]   ;;  %s836_s5 = inlined_call_operand.hbm [shape: f32[128,128], index: 5, kind: input, shape index: {}]   ;;  %s837_s6 = inlined_call_operand.vmem [shape: f32[1,128], index: 6, kind: input, shape index: {}]   ;;  %s838_s7 = inlined_call_operand.hbm [shape: f32[8,128], index: 7, kind: output, shape index: {}]  }
   0x1   :  { %13 = vsyncpa [#allocation6], 0 }
   0x2   :  { %14 = vsyncpa [#allocation9], 0 }
   0x3   :  { %15 = vsyncpa [#allocation4], 0  ;;  %s682_s24 = smov [#allocation5]   ;;  %s564_s28 = scalar_lea.hbm %s832_s1, 512 }
   0x4   :  { %s31_s25 = sshll.u32 %s682_s24, 4  ;;  %p565_p0 = scmp.ne.s32.totalorder %s832_s1, %s564_s28  ;;  %s32_s25 = int_to_ptr.vmem [resolvable:$true] %s31_s25 }
   0x5   :  { %p568_p1 = scmp.lt.u32.totalorder %s564_s28, %s832_s1 }
   0x7   :  { %p570_p2 = pnand %p568_p1, %p565_p0 }
   0x9   :  { %573 = shalt.err (!%p570_p2)
}
   0xa   :  { %s574_s10 = scalar_lea.vmem %s32_s25, 512  ;;  %p579_p4 = scmp.lt.s32.totalorder %s32_s25, %s32_s25 }
   0xb   :  { %p575_p3 = scmp.ne.s32.totalorder %s32_s25, %s574_s10  ;;  %p580_p5 = scmp.lt.s32.totalorder %s574_s10, %s574_s10 }
   0xd   :  { %p581_p6 = por %p580_p5, %p579_p4 }
   0xf   :  { %p582_p7 = pnand %p581_p6, %p575_p3 }
  0x11   :  { %585 = shalt.err (!%p582_p7)
}
  0x12   :  { %s683_s11 = smov 128   ;;  %s684_s12 = smov 8  }
  0x13   :  { %37 = dma.hbm_to_vmem [thread:$0]  %s832_s1, 512, %s32_s25, [#allocation6], %s683_s11, %s683_s11, %s684_s12  }
  0x14   :  { %s685_s15 = smov [#allocation2]   ;;  %s686_s17 = smov [#allocation7]  }
  0x15   :  { %s22_s16 = sshll.u32 %s685_s15, 4  ;;  %s45_s18 = sshll.u32 %s686_s17, 4  ;;  %s23_s16 = int_to_ptr.vmem [resolvable:$true] %s22_s16  ;;  %s46_s18 = int_to_ptr.vmem [resolvable:$true] %s45_s18 }
  0x16   :  { %s586_s21 = scalar_lea.hbm %s831_s0, 128 }
  0x17   :  { %p587_p8 = scmp.ne.s32.totalorder %s831_s0, %s586_s21  ;;  %p590_p9 = scmp.lt.u32.totalorder %s586_s21, %s831_s0 }
  0x19   :  { %p592_p10 = pnand %p590_p9, %p587_p8 }
  0x1b   :  { %595 = shalt.err (!%p592_p10)
}
  0x1c   :  { %s596_s1 = scalar_lea.vmem %s23_s16, 128  ;;  %p601_p12 = scmp.lt.s32.totalorder %s23_s16, %s23_s16 }
  0x1d   :  { %p597_p11 = scmp.ne.s32.totalorder %s23_s16, %s596_s1  ;;  %p602_p13 = scmp.lt.s32.totalorder %s596_s1, %s596_s1 }
  0x1f   :  { %p603_p0 = por %p602_p13, %p601_p12 }
  0x21   :  { %p604_p1 = pnand %p603_p0, %p597_p11 }
  0x23   :  { %607 = shalt.err (!%p604_p1)
}
  0x24   :  { %25 = dma.hbm_to_vmem [thread:$0]  %s831_s0, 128, %s23_s16, [#allocation3]  }
  0x25   :  { %s608_s30 = scalar_lea.hbm %s834_s3, 2048 }
  0x26   :  { %p609_p2 = scmp.ne.s32.totalorder %s834_s3, %s608_s30  ;;  %p612_p3 = scmp.lt.u32.totalorder %s608_s30, %s834_s3 }
  0x28   :  { %p614_p4 = pnand %p612_p3, %p609_p2 }
  0x2a   :  { %617 = shalt.err (!%p614_p4)
}
  0x2b   :  { %s618_s14 = scalar_lea.vmem %s46_s18, 2048  ;;  %p623_p6 = scmp.lt.s32.totalorder %s46_s18, %s46_s18 }
  0x2c   :  { %p619_p5 = scmp.ne.s32.totalorder %s46_s18, %s618_s14  ;;  %p624_p7 = scmp.lt.s32.totalorder %s618_s14, %s618_s14 }
  0x2e   :  { %p625_p8 = por %p624_p7, %p623_p6 }
  0x30   :  { %p626_p9 = pnand %p625_p8, %p619_p5 }
  0x32   :  { %629 = shalt.err (!%p626_p9)
}
  0x33   :  { %51 = dma.hbm_to_vmem [thread:$0]  %s834_s3, 2048, %s46_s18, [#allocation6], %s683_s11, %s683_s11, %s684_s12  }
  0x34   :  { %s687_s16 = smov [#allocation8]   ;;  %s630_s21 = scalar_lea.hbm %s836_s5, 2048 }
  0x35   :  { %s59_s17 = sshll.u32 %s687_s16, 4  ;;  %p631_p10 = scmp.ne.s32.totalorder %s836_s5, %s630_s21  ;;  %s60_s17 = int_to_ptr.vmem [resolvable:$true] %s59_s17 }
  0x36   :  { %p634_p11 = scmp.lt.u32.totalorder %s630_s21, %s836_s5 }
  0x38   :  { %p636_p12 = pnand %p634_p11, %p631_p10 }
  0x3a   :  { %639 = shalt.err (!%p636_p12)
}
  0x3b   :  { %s640_s1 = scalar_lea.vmem %s60_s17, 2048  ;;  %p645_p0 = scmp.lt.s32.totalorder %s60_s17, %s60_s17 }
  0x3c   :  { %p641_p13 = scmp.ne.s32.totalorder %s60_s17, %s640_s1  ;;  %p646_p1 = scmp.lt.s32.totalorder %s640_s1, %s640_s1 }
  0x3e   :  { %p647_p2 = por %p646_p1, %p645_p0 }
  0x40   :  { %p648_p3 = pnand %p647_p2, %p641_p13 }
  0x42   :  { %651 = shalt.err (!%p648_p3)
}
  0x43   :  { %65 = dma.hbm_to_vmem [thread:$0]  %s836_s5, 2048, %s60_s17, [#allocation9], %s683_s11, %s683_s11, %s684_s12  }
  0x44   :  { %674 = dma.done.wait [#allocation3], 128  }
  0x45   :  { %675 = vsyncadd [#allocation3], 4294967168 }
  0x46   :  { %676 = dma.done.wait [#allocation6], 2560  }
  0x47   :  { %677 = vsyncadd [#allocation6], 4294964736 }
  0x48   :  { %678 = dma.done.wait [#allocation9], 2048  }
  0x49   :  { %679 = vsyncadd [#allocation9], 4294965248  ;;  %v688_v0 = vmov 0.0|0.0   ;;  %vm689_vm0 = vmmov 0   ;;  %v690_v1 = vmov 0.0   ;;  %v81_v2 = vld [vmem:[#allocation5] sm:$0xff] }
  0x4a   :  { %496 = vmatprep.subr.bf16.mxu0 %v688_v0  ;;  %423 = vmatprep.mubr.msk.f32.mxu0 %vm689_vm0, %v690_v1  ;;  %v82_v3 = vld [vmem:[#allocation5 + $0x8] sm:$0xff]  ;;  %v83_v4 = vld [vmem:[#allocation5 + $0x10] sm:$0xff]  ;;  %v84_v6 = vld [vmem:[#allocation5 + $0x18] sm:$0xff]  ;;  %vm92_vm1 = vcmask 261120   ;;  %s691_s28 = smov [#allocation10]  }
  0x4b   :  { %502 = vmatprep.subr.bf16.mxu1 %v688_v0  ;;  %458 = vmatprep.mubr.msk.f32.mxu1 %vm689_vm0, %v690_v1  ;;  %v497_v5 = vpack.c.bf16 %v82_v3, %v81_v2  ;;  %v167_v7 = vld [vmem:[#allocation7] sm:$0xff]  ;;  %v168_v8 = vld [vmem:[#allocation7 + $0x8] sm:$0xff]  ;;  %v169_v9 = vld [vmem:[#allocation7 + $0x10] sm:$0xff]  ;;  %v500_v11 = vpack.c.bf16 %v84_v6, %v83_v4  ;;  %s361_s29 = sshll.u32 %s691_s28, 4  ;;  %s362_s29 = int_to_ptr.vmem [resolvable:$true] %s361_s29 }
  0x4c   :  { %v170_v10 = vld [vmem:[#allocation7 + $0x18] sm:$0xff]  ;;  %v503_v12 = vpack.c.bf16 %v168_v8, %v167_v7  ;;  %v171_v14 = vld [vmem:[#allocation7 + $0x20] sm:$0xff]  ;;  %v172_v15 = vld [vmem:[#allocation7 + $0x28] sm:$0xff]  ;;  %s652_s30 = scalar_lea.vmem %s362_s29, 128  ;;  %p657_p5 = scmp.lt.s32.totalorder %s362_s29, %s362_s29 }
  0x4d   :  { %498 = vmatpush3.bf16.msra.mxu0 %v497_v5  ;;  %v506_v13 = vpack.c.bf16 %v170_v10, %v169_v9  ;;  %v80_v16 = vld [vmem:[#allocation2] sm:$0xff]  ;;  %v509_v17 = vpack.c.bf16 %v172_v15, %v171_v14  ;;  %v173_v18 = vld [vmem:[#allocation7 + $0x30] sm:$0xff]  ;;  %v175_v21 = vld [vmem:[#allocation7 + $0x40] sm:$0xff]  ;;  %p653_p4 = scmp.ne.s32.totalorder %s362_s29, %s652_s30  ;;  %p658_p6 = scmp.lt.s32.totalorder %s652_s30, %s652_s30 }
  0x4e   :  { %499 = vmatprep.subr.bf16.mxu0 %v688_v0  ;;  %504 = vmatpush3.bf16.msra.mxu1 %v503_v12  ;;  %v174_v19 = vld [vmem:[#allocation7 + $0x38] sm:$0xff]  ;;  %v176_v22 = vld [vmem:[#allocation7 + $0x48] sm:$0xff]  ;;  %v177_v24 = vld [vmem:[#allocation7 + $0x50] sm:$0xff] }
  0x4f   :  { %505 = vmatprep.subr.bf16.mxu1 %v688_v0  ;;  %v512_v20 = vpack.c.bf16 %v174_v19, %v173_v18  ;;  %v515_v23 = vpack.c.bf16 %v176_v22, %v175_v21  ;;  %v178_v25 = vld [vmem:[#allocation7 + $0x58] sm:$0xff]  ;;  %v179_v27 = vld [vmem:[#allocation7 + $0x60] sm:$0xff]  ;;  %v180_v28 = vld [vmem:[#allocation7 + $0x68] sm:$0xff]  ;;  %p659_p7 = por %p658_p6, %p657_p5 }
  0x50   :  { %v518_v26 = vpack.c.bf16 %v178_v25, %v177_v24  ;;  %v521_v29 = vpack.c.bf16 %v180_v28, %v179_v27  ;;  %v181_v30 = vld [vmem:[#allocation7 + $0x70] sm:$0xff]  ;;  %v182_v31 = vld [vmem:[#allocation7 + $0x78] sm:$0xff]  ;;  %v261_v33 = vld [vmem:[#allocation8] sm:$0xff] }
  0x51   :  { %501 = vmatpush3.bf16.msra.mxu0 %v500_v11  ;;  %v524_v32 = vpack.c.bf16 %v182_v31, %v181_v30  ;;  %v262_v34 = vld [vmem:[#allocation8 + $0x8] sm:$0xff]  ;;  %v263_v35 = vld [vmem:[#allocation8 + $0x10] sm:$0xff]  ;;  %v264_v37 = vld [vmem:[#allocation8 + $0x18] sm:$0xff]  ;;  %p660_p8 = pnand %p659_p7, %p653_p4 }
  0x52   :  { %526 = vmatprep.subr.bf16.mxu0 %v688_v0  ;;  %507 = vmatpush3.bf16.msra.mxu1 %v506_v13  ;;  %v527_v36 = vpack.c.bf16 %v262_v34, %v261_v33  ;;  %v530_v38 = vpack.c.bf16 %v264_v37, %v263_v35  ;;  %v265_v39 = vld [vmem:[#allocation8 + $0x20] sm:$0xff]  ;;  %v266_v40 = vld [vmem:[#allocation8 + $0x28] sm:$0xff]  ;;  %v267_v42 = vld [vmem:[#allocation8 + $0x30] sm:$0xff] }
  0x53   :  { %508 = vmatprep.subr.bf16.mxu1 %v688_v0  ;;  %v533_v41 = vpack.c.bf16 %v266_v40, %v265_v39  ;;  %v268_v43 = vld [vmem:[#allocation8 + $0x38] sm:$0xff]  ;;  %v269_v45 = vld [vmem:[#allocation8 + $0x40] sm:$0xff]  ;;  %v270_v46 = vld [vmem:[#allocation8 + $0x48] sm:$0xff] }
  0x54   :  { %424 = vmatmul.mubr.msk.f32.vlgmr.msra.gmra.mrb[0].mxu0 %vm92_vm1, %v80_v16  ;;  %v536_v44 = vpack.c.bf16 %v268_v43, %v267_v42  ;;  %v539_v47 = vpack.c.bf16 %v270_v46, %v269_v45  ;;  %v372_v48 = vld [vmem:[%s833_s2] ss:$0 sm:$0xff]  ;;  %v271_v53 = vld [vmem:[#allocation8 + $0x50] sm:$0xff]  ;;  %v273_v56 = vld [vmem:[#allocation8 + $0x60] sm:$0xff] }
  0x55   :  { %493 = vmatprep.mubr.msk.f32.mxu0 %vm689_vm0, %v690_v1  ;;  %528 = vmatpush3.bf16.msra.mxu0 %v527_v36  ;;  %v272_v54 = vld [vmem:[#allocation8 + $0x58] sm:$0xff]  ;;  %v274_v57 = vld [vmem:[#allocation8 + $0x68] sm:$0xff]  ;;  %v275_v59 = vld [vmem:[#allocation8 + $0x70] sm:$0xff] }
  0x56   :  { %510 = vmatpush3.bf16.msra.mxu1 %v509_v17  ;;  %529 = vmatprep.subr.bf16.mxu0 %v688_v0  ;;  %v542_v55 = vpack.c.bf16 %v272_v54, %v271_v53  ;;  %v545_v58 = vpack.c.bf16 %v274_v57, %v273_v56  ;;  %v276_v60 = vld [vmem:[#allocation8 + $0x78] sm:$0xff] }
  0x57   :  { %511 = vmatprep.subr.bf16.mxu1 %v688_v0  ;;  %v548_v61 = vpack.c.bf16 %v276_v60, %v275_v59  ;;  %v374_v62 = vld [vmem:[%s835_s4] ss:$0 sm:$0xff] }
  0x58   :  { %v375_v4 = vld [vmem:[%s837_s6] ss:$0 sm:$0xff] }
  0x59   :  { %531 = vmatpush3.bf16.msra.mxu0 %v530_v38 }
  0x5a   :  { %513 = vmatpush3.bf16.msra.mxu1 %v512_v20  ;;  %532 = vmatprep.subr.bf16.mxu0 %v688_v0 }
  0x5b   :  { %514 = vmatprep.subr.bf16.mxu1 %v688_v0 }
  0x5d   :  { %534 = vmatpush3.bf16.msra.mxu0 %v533_v41 }
  0x5e   :  { %516 = vmatpush3.bf16.msra.mxu1 %v515_v23  ;;  %535 = vmatprep.subr.bf16.mxu0 %v688_v0 }
  0x5f   :  { %517 = vmatprep.subr.bf16.mxu1 %v688_v0 }
  0x61   :  { %537 = vmatpush3.bf16.msra.mxu0 %v536_v44 }
  0x62   :  { %519 = vmatpush3.bf16.msra.mxu1 %v518_v26  ;;  %538 = vmatprep.subr.bf16.mxu0 %v688_v0 }
  0x63   :  { %520 = vmatprep.subr.bf16.mxu1 %v688_v0 }
  0x65   :  { %540 = vmatpush3.bf16.msra.mxu0 %v539_v47 }
  0x66   :  { %522 = vmatpush3.bf16.msra.mxu1 %v521_v29  ;;  %541 = vmatprep.subr.bf16.mxu0 %v688_v0 }
  0x67   :  { %523 = vmatprep.subr.bf16.mxu1 %v688_v0 }
  0x69   :  { %543 = vmatpush3.bf16.msra.mxu0 %v542_v55 }
  0x6a   :  { %525 = vmatpush3.bf16.msra.mxu1 %v524_v32  ;;  %544 = vmatprep.subr.bf16.mxu0 %v688_v0 }
  0x6d   :  { %546 = vmatpush3.bf16.msra.mxu0 %v545_v58 }
  0x6e   :  { %547 = vmatprep.subr.bf16.mxu0 %v688_v0 }
  0x71   :  { %549 = vmatpush3.bf16.msra.mxu0 %v548_v61 }
 0x127   :  { %v162_v49 = vpop.f32.mrb[0].mxu0 }
 0x128   :  { %v163_v50 = vadd.f32 %v372_v48, %v162_v49  ;;  %v425_v51 = vpop.f32.mrb[1].mxu0 }
 0x12a   :  { %560 = vtanh.f32 %v163_v50 }
 0x134   :  { %v561_v52 = vpop.eup %560 }
 0x135   :  { %459 = vmatmul.mubr.f32.vlgmr.msra.gmra.mrb[0].mxu1 %v561_v52 }
 0x208   :  { %v256_v63 = vpop.f32.mrb[0].mxu1 }
 0x209   :  { %v257_v1 = vadd.f32 %v374_v62, %v256_v63  ;;  %v460_v2 = vpop.f32.mrb[1].mxu1 }
 0x20b   :  { %562 = vtanh.f32 %v257_v1 }
 0x215   :  { %v563_v3 = vpop.eup %562 }
 0x216   :  { %494 = vmatmul.mubr.f32.vlgmr.msra.gmra.mrb[2].mxu0 %v563_v3 }
 0x2e9   :  { %v350_v5 = vpop.f32.mrb[2].mxu0 }
 0x2ea   :  { %v351_v6 = vadd.f32 %v375_v4, %v350_v5  ;;  %v495_v0 = vpop.f32.mrb[3].mxu0 }
 0x2ec   :  { %354 = vst [vmem:[#allocation10] sm:$0xff] %v351_v6 }
 0x2ed   :  { %663 = shalt.err (!%p660_p8)
}
 0x2ee   :  { %s664_s9 = scalar_lea.hbm %s838_s7, 128 }
 0x2ef   :  { %p665_p9 = scmp.ne.s32.totalorder %s838_s7, %s664_s9  ;;  %p668_p10 = scmp.lt.u32.totalorder %s664_s9, %s838_s7 }
 0x2f1   :  { %p670_p11 = pnand %p668_p10, %p665_p9 }
 0x2f3   :  { %673 = shalt.err (!%p670_p11)
}
 0x2f4   :  { %364 = dma.vmem_to_hbm [thread:$0]  %s362_s29, 128, %s838_s7, [#allocation4]  }
 0x2f5   :  { %680 = dma.done.wait [#allocation4], 128  }
 0x2f6   :  { %681 = vsyncadd [#allocation4], 4294967168 }
 0x2f7   :  { %368 = vsyncpa [#allocation3], 1 }
 0x2f8   :  { %369 = vsyncpa [#allocation6], 1 }
 0x2f9   :  { %370 = vsyncpa [#allocation9], 1 }
 0x2fa   :  { %371 = vsyncpa [#allocation4], 1 }

// kernel: tpu_custom_call.1
= control target key start
LH: loop header
LB: loop body
LE: loop exit
PB: predicated region body
PF: predicated region fallthrough
CT: control target
= control target key end

     0   :  { %12 = vsyncpa [#allocation3], 0  ;;  %s831_s0 = inlined_call_operand.hbm [shape: f32[8,32], index: 0, kind: input, shape index: {}]   ;;  %s832_s1 = inlined_call_operand.hbm [shape: f32[32,128], index: 1, kind: input, shape index: {}]   ;;  %s833_s2 = inlined_call_operand.vmem [shape: f32[1,128], index: 2, kind: input, shape index: {}]   ;;  %s834_s3 = inlined_call_operand.hbm [shape: f32[128,128], index: 3, kind: input, shape index: {}]   ;;  %s835_s4 = inlined_call_operand.vmem [shape: f32[1,128], index: 4, kind: input, shape index: {}]   ;;  %s836_s5 = inlined_call_operand.hbm [shape: f32[128,128], index: 5, kind: input, shape index: {}]   ;;  %s837_s6 = inlined_call_operand.vmem [shape: f32[1,128], index: 6, kind: input, shape index: {}]   ;;  %s838_s7 = inlined_call_operand.hbm [shape: f32[8,128], index: 7, kind: output, shape index: {}]  }
   0x1   :  { %13 = vsyncpa [#allocation6], 0 }
   0x2   :  { %14 = vsyncpa [#allocation9], 0 }
   0x3   :  { %15 = vsyncpa [#allocation4], 0  ;;  %s682_s24 = smov [#allocation5]   ;;  %s564_s28 = scalar_lea.hbm %s832_s1, 512 }
   0x4   :  { %s31_s25 = sshll.u32 %s682_s24, 4  ;;  %p565_p0 = scmp.ne.s32.totalorder %s832_s1, %s564_s28  ;;  %s32_s25 = int_to_ptr.vmem [resolvable:$true] %s31_s25 }
   0x5   :  { %p568_p1 = scmp.lt.u32.totalorder %s564_s28, %s832_s1 }
   0x7   :  { %p570_p2 = pnand %p568_p1, %p565_p0 }
   0x9   :  { %573 = shalt.err (!%p570_p2)
}
   0xa   :  { %s574_s10 = scalar_lea.vmem %s32_s25, 512  ;;  %p579_p4 = scmp.lt.s32.totalorder %s32_s25, %s32_s25 }
   0xb   :  { %p575_p3 = scmp.ne.s32.totalorder %s32_s25, %s574_s10  ;;  %p580_p5 = scmp.lt.s32.totalorder %s574_s10, %s574_s10 }
   0xd   :  { %p581_p6 = por %p580_p5, %p579_p4 }
   0xf   :  { %p582_p7 = pnand %p581_p6, %p575_p3 }
  0x11   :  { %585 = shalt.err (!%p582_p7)
}
  0x12   :  { %s683_s11 = smov 128   ;;  %s684_s12 = smov 8  }
  0x13   :  { %37 = dma.hbm_to_vmem [thread:$0]  %s832_s1, 512, %s32_s25, [#allocation6], %s683_s11, %s683_s11, %s684_s12  }
  0x14   :  { %s685_s15 = smov [#allocation2]   ;;  %s686_s17 = smov [#allocation7]  }
  0x15   :  { %s22_s16 = sshll.u32 %s685_s15, 4  ;;  %s45_s18 = sshll.u32 %s686_s17, 4  ;;  %s23_s16 = int_to_ptr.vmem [resolvable:$true] %s22_s16  ;;  %s46_s18 = int_to_ptr.vmem [resolvable:$true] %s45_s18 }
  0x16   :  { %s586_s21 = scalar_lea.hbm %s831_s0, 128 }
  0x17   :  { %p587_p8 = scmp.ne.s32.totalorder %s831_s0, %s586_s21  ;;  %p590_p9 = scmp.lt.u32.totalorder %s586_s21, %s831_s0 }
  0x19   :  { %p592_p10 = pnand %p590_p9, %p587_p8 }
  0x1b   :  { %595 = shalt.err (!%p592_p10)
}
  0x1c   :  { %s596_s1 = scalar_lea.vmem %s23_s16, 128  ;;  %p601_p12 = scmp.lt.s32.totalorder %s23_s16, %s23_s16 }
  0x1d   :  { %p597_p11 = scmp.ne.s32.totalorder %s23_s16, %s596_s1  ;;  %p602_p13 = scmp.lt.s32.totalorder %s596_s1, %s596_s1 }
  0x1f   :  { %p603_p0 = por %p602_p13, %p601_p12 }
  0x21   :  { %p604_p1 = pnand %p603_p0, %p597_p11 }
  0x23   :  { %607 = shalt.err (!%p604_p1)
}
  0x24   :  { %25 = dma.hbm_to_vmem [thread:$0]  %s831_s0, 128, %s23_s16, [#allocation3]  }
  0x25   :  { %s608_s30 = scalar_lea.hbm %s834_s3, 2048 }
  0x26   :  { %p609_p2 = scmp.ne.s32.totalorder %s834_s3, %s608_s30  ;;  %p612_p3 = scmp.lt.u32.totalorder %s608_s30, %s834_s3 }
  0x28   :  { %p614_p4 = pnand %p612_p3, %p609_p2 }
  0x2a   :  { %617 = shalt.err (!%p614_p4)
}
  0x2b   :  { %s618_s14 = scalar_lea.vmem %s46_s18, 2048  ;;  %p623_p6 = scmp.lt.s32.totalorder %s46_s18, %s46_s18 }
  0x2c   :  { %p619_p5 = scmp.ne.s32.totalorder %s46_s18, %s618_s14  ;;  %p624_p7 = scmp.lt.s32.totalorder %s618_s14, %s618_s14 }
  0x2e   :  { %p625_p8 = por %p624_p7, %p623_p6 }
  0x30   :  { %p626_p9 = pnand %p625_p8, %p619_p5 }
  0x32   :  { %629 = shalt.err (!%p626_p9)
}
  0x33   :  { %51 = dma.hbm_to_vmem [thread:$0]  %s834_s3, 2048, %s46_s18, [#allocation6], %s683_s11, %s683_s11, %s684_s12  }
  0x34   :  { %s687_s16 = smov [#allocation8]   ;;  %s630_s21 = scalar_lea.hbm %s836_s5, 2048 }
  0x35   :  { %s59_s17 = sshll.u32 %s687_s16, 4  ;;  %p631_p10 = scmp.ne.s32.totalorder %s836_s5, %s630_s21  ;;  %s60_s17 = int_to_ptr.vmem [resolvable:$true] %s59_s17 }
  0x36   :  { %p634_p11 = scmp.lt.u32.totalorder %s630_s21, %s836_s5 }
  0x38   :  { %p636_p12 = pnand %p634_p11, %p631_p10 }
  0x3a   :  { %639 = shalt.err (!%p636_p12)
}
  0x3b   :  { %s640_s1 = scalar_lea.vmem %s60_s17, 2048  ;;  %p645_p0 = scmp.lt.s32.totalorder %s60_s17, %s60_s17 }
  0x3c   :  { %p641_p13 = scmp.ne.s32.totalorder %s60_s17, %s640_s1  ;;  %p646_p1 = scmp.lt.s32.totalorder %s640_s1, %s640_s1 }
  0x3e   :  { %p647_p2 = por %p646_p1, %p645_p0 }
  0x40   :  { %p648_p3 = pnand %p647_p2, %p641_p13 }
  0x42   :  { %651 = shalt.err (!%p648_p3)
}
  0x43   :  { %65 = dma.hbm_to_vmem [thread:$0]  %s836_s5, 2048, %s60_s17, [#allocation9], %s683_s11, %s683_s11, %s684_s12  }
  0x44   :  { %674 = dma.done.wait [#allocation3], 128  }
  0x45   :  { %675 = vsyncadd [#allocation3], 4294967168 }
  0x46   :  { %676 = dma.done.wait [#allocation6], 2560  }
  0x47   :  { %677 = vsyncadd [#allocation6], 4294964736 }
  0x48   :  { %678 = dma.done.wait [#allocation9], 2048  }
  0x49   :  { %679 = vsyncadd [#allocation9], 4294965248  ;;  %v688_v0 = vmov 0.0|0.0   ;;  %vm689_vm0 = vmmov 0   ;;  %v690_v1 = vmov 0.0   ;;  %v81_v2 = vld [vmem:[#allocation5] sm:$0xff] }
  0x4a   :  { %496 = vmatprep.subr.bf16.mxu0 %v688_v0  ;;  %423 = vmatprep.mubr.msk.f32.mxu0 %vm689_vm0, %v690_v1  ;;  %v82_v3 = vld [vmem:[#allocation5 + $0x8] sm:$0xff]  ;;  %v83_v4 = vld [vmem:[#allocation5 + $0x10] sm:$0xff]  ;;  %v84_v6 = vld [vmem:[#allocation5 + $0x18] sm:$0xff]  ;;  %vm92_vm1 = vcmask 261120   ;;  %s691_s28 = smov [#allocation10]  }
  0x4b   :  { %502 = vmatprep.subr.bf16.mxu1 %v688_v0  ;;  %458 = vmatprep.mubr.msk.f32.mxu1 %vm689_vm0, %v690_v1  ;;  %v497_v5 = vpack.c.bf16 %v82_v3, %v81_v2  ;;  %v167_v7 = vld [vmem:[#allocation7] sm:$0xff]  ;;  %v168_v8 = vld [vmem:[#allocation7 + $0x8] sm:$0xff]  ;;  %v169_v9 = vld [vmem:[#allocation7 + $0x10] sm:$0xff]  ;;  %v500_v11 = vpack.c.bf16 %v84_v6, %v83_v4  ;;  %s361_s29 = sshll.u32 %s691_s28, 4  ;;  %s362_s29 = int_to_ptr.vmem [resolvable:$true] %s361_s29 }
  0x4c   :  { %v170_v10 = vld [vmem:[#allocation7 + $0x18] sm:$0xff]  ;;  %v503_v12 = vpack.c.bf16 %v168_v8, %v167_v7  ;;  %v171_v14 = vld [vmem:[#allocation7 + $0x20] sm:$0xff]  ;;  %v172_v15 = vld [vmem:[#allocation7 + $0x28] sm:$0xff]  ;;  %s652_s30 = scalar_lea.vmem %s362_s29, 128  ;;  %p657_p5 = scmp.lt.s32.totalorder %s362_s29, %s362_s29 }
  0x4d   :  { %498 = vmatpush3.bf16.msra.mxu0 %v497_v5  ;;  %v506_v13 = vpack.c.bf16 %v170_v10, %v169_v9  ;;  %v80_v16 = vld [vmem:[#allocation2] sm:$0xff]  ;;  %v509_v17 = vpack.c.bf16 %v172_v15, %v171_v14  ;;  %v173_v18 = vld [vmem:[#allocation7 + $0x30] sm:$0xff]  ;;  %v175_v21 = vld [vmem:[#allocation7 + $0x40] sm:$0xff]  ;;  %p653_p4 = scmp.ne.s32.totalorder %s362_s29, %s652_s30  ;;  %p658_p6 = scmp.lt.s32.totalorder %s652_s30, %s652_s30 }
  0x4e   :  { %499 = vmatprep.subr.bf16.mxu0 %v688_v0  ;;  %504 = vmatpush3.bf16.msra.mxu1 %v503_v12  ;;  %v174_v19 = vld [vmem:[#allocation7 + $0x38] sm:$0xff]  ;;  %v176_v22 = vld [vmem:[#allocation7 + $0x48] sm:$0xff]  ;;  %v177_v24 = vld [vmem:[#allocation7 + $0x50] sm:$0xff] }
  0x4f   :  { %505 = vmatprep.subr.bf16.mxu1 %v688_v0  ;;  %v512_v20 = vpack.c.bf16 %v174_v19, %v173_v18  ;;  %v515_v23 = vpack.c.bf16 %v176_v22, %v175_v21  ;;  %v178_v25 = vld [vmem:[#allocation7 + $0x58] sm:$0xff]  ;;  %v179_v27 = vld [vmem:[#allocation7 + $0x60] sm:$0xff]  ;;  %v180_v28 = vld [vmem:[#allocation7 + $0x68] sm:$0xff]  ;;  %p659_p7 = por %p658_p6, %p657_p5 }
  0x50   :  { %v518_v26 = vpack.c.bf16 %v178_v25, %v177_v24  ;;  %v521_v29 = vpack.c.bf16 %v180_v28, %v179_v27  ;;  %v181_v30 = vld [vmem:[#allocation7 + $0x70] sm:$0xff]  ;;  %v182_v31 = vld [vmem:[#allocation7 + $0x78] sm:$0xff]  ;;  %v261_v33 = vld [vmem:[#allocation8] sm:$0xff] }
  0x51   :  { %501 = vmatpush3.bf16.msra.mxu0 %v500_v11  ;;  %v524_v32 = vpack.c.bf16 %v182_v31, %v181_v30  ;;  %v262_v34 = vld [vmem:[#allocation8 + $0x8] sm:$0xff]  ;;  %v263_v35 = vld [vmem:[#allocation8 + $0x10] sm:$0xff]  ;;  %v264_v37 = vld [vmem:[#allocation8 + $0x18] sm:$0xff]  ;;  %p660_p8 = pnand %p659_p7, %p653_p4 }
  0x52   :  { %526 = vmatprep.subr.bf16.mxu0 %v688_v0  ;;  %507 = vmatpush3.bf16.msra.mxu1 %v506_v13  ;;  %v527_v36 = vpack.c.bf16 %v262_v34, %v261_v33  ;;  %v530_v38 = vpack.c.bf16 %v264_v37, %v263_v35  ;;  %v265_v39 = vld [vmem:[#allocation8 + $0x20] sm:$0xff]  ;;  %v266_v40 = vld [vmem:[#allocation8 + $0x28] sm:$0xff]  ;;  %v267_v42 = vld [vmem:[#allocation8 + $0x30] sm:$0xff] }
  0x53   :  { %508 = vmatprep.subr.bf16.mxu1 %v688_v0  ;;  %v533_v41 = vpack.c.bf16 %v266_v40, %v265_v39  ;;  %v268_v43 = vld [vmem:[#allocation8 + $0x38] sm:$0xff]  ;;  %v269_v45 = vld [vmem:[#allocation8 + $0x40] sm:$0xff]  ;;  %v270_v46 = vld [vmem:[#allocation8 + $0x48] sm:$0xff] }
  0x54   :  { %424 = vmatmul.mubr.msk.f32.vlgmr.msra.gmra.mrb[0].mxu0 %vm92_vm1, %v80_v16  ;;  %v536_v44 = vpack.c.bf16 %v268_v43, %v267_v42  ;;  %v539_v47 = vpack.c.bf16 %v270_v46, %v269_v45  ;;  %v372_v48 = vld [vmem:[%s833_s2] ss:$0 sm:$0xff]  ;;  %v271_v53 = vld [vmem:[#allocation8 + $0x50] sm:$0xff]  ;;  %v273_v56 = vld [vmem:[#allocation8 + $0x60] sm:$0xff] }
  0x55   :  { %493 = vmatprep.mubr.msk.f32.mxu0 %vm689_vm0, %v690_v1  ;;  %528 = vmatpush3.bf16.msra.mxu0 %v527_v36  ;;  %v272_v54 = vld [vmem:[#allocation8 + $0x58] sm:$0xff]  ;;  %v274_v57 = vld [vmem:[#allocation8 + $0x68] sm:$0xff]  ;;  %v275_v59 = vld [vmem:[#allocation8 + $0x70] sm:$0xff] }
  0x56   :  { %510 = vmatpush3.bf16.msra.mxu1 %v509_v17  ;;  %529 = vmatprep.subr.bf16.mxu0 %v688_v0  ;;  %v542_v55 = vpack.c.bf16 %v272_v54, %v271_v53  ;;  %v545_v58 = vpack.c.bf16 %v274_v57, %v273_v56  ;;  %v276_v60 = vld [vmem:[#allocation8 + $0x78] sm:$0xff] }
  0x57   :  { %511 = vmatprep.subr.bf16.mxu1 %v688_v0  ;;  %v548_v61 = vpack.c.bf16 %v276_v60, %v275_v59  ;;  %v374_v62 = vld [vmem:[%s835_s4] ss:$0 sm:$0xff] }
  0x58   :  { %v375_v4 = vld [vmem:[%s837_s6] ss:$0 sm:$0xff] }
  0x59   :  { %531 = vmatpush3.bf16.msra.mxu0 %v530_v38 }
  0x5a   :  { %513 = vmatpush3.bf16.msra.mxu1 %v512_v20  ;;  %532 = vmatprep.subr.bf16.mxu0 %v688_v0 }
  0x5b   :  { %514 = vmatprep.subr.bf16.mxu1 %v688_v0 }
  0x5d   :  { %534 = vmatpush3.bf16.msra.mxu0 %v533_v41 }
  0x5e   :  { %516 = vmatpush3.bf16.msra.mxu1 %v515_v23  ;;  %535 = vmatprep.subr.bf16.mxu0 %v688_v0 }
  0x5f   :  { %517 = vmatprep.subr.bf16.mxu1 %v688_v0 }
  0x61   :  { %537 = vmatpush3.bf16.msra.mxu0 %v536_v44 }
  0x62   :  { %519 = vmatpush3.bf16.msra.mxu1 %v518_v26  ;;  %538 = vmatprep.subr.bf16.mxu0 %v688_v0 }
  0x63   :  { %520 = vmatprep.subr.bf16.mxu1 %v688_v0 }
  0x65   :  { %540 = vmatpush3.bf16.msra.mxu0 %v539_v47 }
  0x66   :  { %522 = vmatpush3.bf16.msra.mxu1 %v521_v29  ;;  %541 = vmatprep.subr.bf16.mxu0 %v688_v0 }
  0x67   :  { %523 = vmatprep.subr.bf16.mxu1 %v688_v0 }
  0x69   :  { %543 = vmatpush3.bf16.msra.mxu0 %v542_v55 }
  0x6a   :  { %525 = vmatpush3.bf16.msra.mxu1 %v524_v32  ;;  %544 = vmatprep.subr.bf16.mxu0 %v688_v0 }
  0x6d   :  { %546 = vmatpush3.bf16.msra.mxu0 %v545_v58 }
  0x6e   :  { %547 = vmatprep.subr.bf16.mxu0 %v688_v0 }
  0x71   :  { %549 = vmatpush3.bf16.msra.mxu0 %v548_v61 }
 0x127   :  { %v162_v49 = vpop.f32.mrb[0].mxu0 }
 0x128   :  { %v163_v50 = vadd.f32 %v372_v48, %v162_v49  ;;  %v425_v51 = vpop.f32.mrb[1].mxu0 }
 0x12a   :  { %560 = vtanh.f32 %v163_v50 }
 0x134   :  { %v561_v52 = vpop.eup %560 }
 0x135   :  { %459 = vmatmul.mubr.f32.vlgmr.msra.gmra.mrb[0].mxu1 %v561_v52 }
 0x208   :  { %v256_v63 = vpop.f32.mrb[0].mxu1 }
 0x209   :  { %v257_v1 = vadd.f32 %v374_v62, %v256_v63  ;;  %v460_v2 = vpop.f32.mrb[1].mxu1 }
 0x20b   :  { %562 = vtanh.f32 %v257_v1 }
 0x215   :  { %v563_v3 = vpop.eup %562 }
 0x216   :  { %494 = vmatmul.mubr.f32.vlgmr.msra.gmra.mrb[2].mxu0 %v563_v3 }
 0x2e9   :  { %v350_v5 = vpop.f32.mrb[2].mxu0 }
 0x2ea   :  { %v351_v6 = vadd.f32 %v375_v4, %v350_v5  ;;  %v495_v0 = vpop.f32.mrb[3].mxu0 }
 0x2ec   :  { %354 = vst [vmem:[#allocation10] sm:$0xff] %v351_v6 }
 0x2ed   :  { %663 = shalt.err (!%p660_p8)
}
 0x2ee   :  { %s664_s9 = scalar_lea.hbm %s838_s7, 128 }
 0x2ef   :  { %p665_p9 = scmp.ne.s32.totalorder %s838_s7, %s664_s9  ;;  %p668_p10 = scmp.lt.u32.totalorder %s664_s9, %s838_s7 }
 0x2f1   :  { %p670_p11 = pnand %p668_p10, %p665_p9 }
 0x2f3   :  { %673 = shalt.err (!%p670_p11)
}
 0x2f4   :  { %364 = dma.vmem_to_hbm [thread:$0]  %s362_s29, 128, %s838_s7, [#allocation4]  }
 0x2f5   :  { %680 = dma.done.wait [#allocation4], 128  }
 0x2f6   :  { %681 = vsyncadd [#allocation4], 4294967168 }
 0x2f7   :  { %368 = vsyncpa [#allocation3], 1 }
 0x2f8   :  { %369 = vsyncpa [#allocation6], 1 }
 0x2f9   :  { %370 = vsyncpa [#allocation9], 1 }
 0x2fa   :  { %371 = vsyncpa [#allocation4], 1 }

</bundles_post_ra>
